<compile_context>
chip_gen: v5e
topology: v5e:2x2
jax: 0.10.0
libtpu: 0.0.40
codegen_flags: <defaults>
</compile_context>

<pallas_src>
import jax
import jax.numpy as jnp
from jax import lax
from jax.experimental import pallas as pl
from jax.experimental.pallas import tpu as pltpu


def _round_up(a: int, b: int) -> int:
    return (a + b - 1) // b * b


# --------------------------------------------------------------------------- #
# Pass A: per-graph statistics -> folded (scale, shift) coefficients
# --------------------------------------------------------------------------- #
def _graphnorm_stats_kernel(x_ref, w_ref, b_ref, ms_ref, offs_ref, lens_ref,
                            scale_ref, shift_ref, sumx_ref, sumx2_ref):
    t = pl.program_id(0)
    tile_rows = x_ref.shape[0]
    n_graphs = offs_ref.shape[0]

    @pl.when(t == 0)
    def _init():
        sumx_ref[...] = jnp.zeros_like(sumx_ref)
        sumx2_ref[...] = jnp.zeros_like(sumx2_ref)

    # One-hot segment matrix for this row tile: S[g, i] = 1 iff global row
    # (t*tile_rows + i) belongs to graph g.                 (n_graphs, tile_rows)
    row = t * tile_rows + lax.broadcasted_iota(jnp.int32, (n_graphs, tile_rows), 1)
    offs = offs_ref[...]                       # (n_graphs, 1)
    lens = lens_ref[...]                       # (n_graphs, 1)
    seg = ((row >= offs) & (row < offs + lens)).astype(jnp.float32)

    x = x_ref[...]
    # Per-graph partial sums on the MXU (full f32 contraction precision).
    sumx_ref[...] += jnp.dot(seg, x,
                             precision=lax.Precision.HIGHEST,
                             preferred_element_type=jnp.float32)
    sumx2_ref[...] += jnp.dot(seg, x * x,
                              precision=lax.Precision.HIGHEST,
                              preferred_element_type=jnp.float32)

    @pl.when(t == pl.num_programs(0) - 1)
    def _finalize():
        inv_n = 1.0 / jnp.maximum(lens_ref[...], 1).astype(jnp.float32)  # (B, 1)
        mean = sumx_ref[...] * inv_n                                     # (B, H)
        ex2 = sumx2_ref[...] * inv_n                                     # (B, H)
        ms = ms_ref[...]                                                 # (1, H)
        # One-pass variance of (x - mean*ms):  E[x^2] - mean^2 * (2*ms - ms^2)
        # (clamped at 0 to guard fp cancellation; +1e-6 matches the reference eps).
        var = jnp.maximum(ex2 - mean * mean * (2.0 * ms - ms * ms), 0.0)
        scale = w_ref[...] * lax.rsqrt(var + 1e-6)                       # (B, H)
        scale_ref[...] = scale
        shift_ref[...] = b_ref[...] - mean * ms * scale


# --------------------------------------------------------------------------- #
# Pass B: out = x * scale[graph(row)] + shift[graph(row)]   (one FMA / element)
# --------------------------------------------------------------------------- #
def _graphnorm_apply_kernel(x_ref, scale_ref, shift_ref, offs_ref, lens_ref,
                            out_ref):
    t = pl.program_id(0)
    tile_rows = x_ref.shape[0]
    n_graphs = offs_ref.shape[1]

    row = t * tile_rows + lax.broadcasted_iota(jnp.int32, (tile_rows, n_graphs), 0)
    seg = ((row >= offs_ref[...]) & (row < offs_ref[...] + lens_ref[...])
           ).astype(jnp.float32)                                  # (T, B)
    row_scale = jnp.dot(seg, scale_ref[...],
                        precision=lax.Precision.HIGHEST,
                        preferred_element_type=jnp.float32)       # (T, H)
    row_shift = jnp.dot(seg, shift_ref[...],
                        precision=lax.Precision.HIGHEST,
                        preferred_element_type=jnp.float32)       # (T, H)
    out_ref[...] = (x_ref[...] * row_scale + row_shift).astype(out_ref.dtype)


# --------------------------------------------------------------------------- #
# Wrapper
# --------------------------------------------------------------------------- #
def graph_norm_pallas(x, weight, bias, mean_scale, batch_num_nodes, *,
                      row_tile=512):
    """GraphNorm ('gn') forward.  x: (N, H) float; batch_num_nodes: (B,) int."""
    N, H = x.shape
    B = int(batch_num_nodes.shape[0])

    Hp = _round_up(H, 128)                     # lane-dense feature axis
    Bp = _round_up(max(B, 1), 8)               # sublane-aligned graph axis
    T = min(_round_up(row_tile, 8), _round_up(N, 8))
    Np = _round_up(N, T)
    n_tiles = Np // T

    f32 = jnp.float32
    xp = jnp.pad(x.astype(f32), ((0, Np - N), (0, Hp - H)))
    wp = jnp.pad(weight.astype(f32), (0, Hp - H)).reshape(1, Hp)
    bp = jnp.pad(bias.astype(f32), (0, Hp - H)).reshape(1, Hp)
    msp = jnp.pad(mean_scale.astype(f32), (0, Hp - H)).reshape(1, Hp)

    lens = batch_num_nodes.astype(jnp.int32)
    offs = jnp.concatenate(
        [jnp.zeros((1,), jnp.int32), jnp.cumsum(lens)[:-1].astype(jnp.int32)])
    lens_p = jnp.pad(lens, (0, Bp - B))        # padded graphs: length 0
    offs_p = jnp.pad(offs, (0, Bp - B))

    # ---- Pass A: per-graph folded coefficients ------------------------------
    scale, shift = pl.pallas_call(
        _graphnorm_stats_kernel,
        out_shape=(jax.ShapeDtypeStruct((Bp, Hp), f32),
                   jax.ShapeDtypeStruct((Bp, Hp), f32)),
        grid=(n_tiles,),
        in_specs=[
            pl.BlockSpec((T, Hp), lambda t: (t, 0)),      # x row tile
            pl.BlockSpec((1, Hp), lambda t: (0, 0)),      # weight
            pl.BlockSpec((1, Hp), lambda t: (0, 0)),      # bias
            pl.BlockSpec((1, Hp), lambda t: (0, 0)),      # mean_scale
            pl.BlockSpec((Bp, 1), lambda t: (0, 0)),      # graph offsets
            pl.BlockSpec((Bp, 1), lambda t: (0, 0)),      # graph lengths
        ],
        out_specs=(pl.BlockSpec((Bp, Hp), lambda t: (0, 0)),
                   pl.BlockSpec((Bp, Hp), lambda t: (0, 0))),
        scratch_shapes=[pltpu.VMEM((Bp, Hp), f32),        # sum(x)
                        pltpu.VMEM((Bp, Hp), f32)],       # sum(x*x)
        compiler_params=pltpu.CompilerParams(
            dimension_semantics=("arbitrary",)),          # sequential reduction
    )(xp, wp, bp, msp, offs_p.reshape(Bp, 1), lens_p.reshape(Bp, 1))

    # ---- Pass B: row-tiled normalize (disjoint writes) -----------------------
    outp = pl.pallas_call(
        _graphnorm_apply_kernel,
        out_shape=jax.ShapeDtypeStruct((Np, Hp), x.dtype),
        grid=(n_tiles,),
        in_specs=[
            pl.BlockSpec((T, Hp), lambda t: (t, 0)),      # x row tile
            pl.BlockSpec((Bp, Hp), lambda t: (0, 0)),     # per-graph scale
            pl.BlockSpec((Bp, Hp), lambda t: (0, 0)),     # per-graph shift
            pl.BlockSpec((1, Bp), lambda t: (0, 0)),      # graph offsets
            pl.BlockSpec((1, Bp), lambda t: (0, 0)),      # graph lengths
        ],
        out_specs=pl.BlockSpec((T, Hp), lambda t: (t, 0)),
        compiler_params=pltpu.CompilerParams(
            dimension_semantics=("parallel",)),           # megacore-friendly
    )(xp, scale, shift, offs_p.reshape(1, Bp), lens_p.reshape(1, Bp))

    return outp[:N, :H]


# --------------------------------------------------------------------------- #
# Pure-JAX reference mirroring the PyTorch scatter_add implementation
# --------------------------------------------------------------------------- #
def graph_norm_ref(x, weight, bias, mean_scale, batch_num_nodes):
    B = batch_num_nodes.shape[0]
    seg = jnp.repeat(jnp.arange(B), batch_num_nodes,
                     total_repeat_length=x.shape[0])
    counts = batch_num_nodes.astype(x.dtype)[:, None]
    mean = jax.ops.segment_sum(x, seg, num_segments=B) / counts
    sub = x - mean[seg] * mean_scale
    var = jax.ops.segment_sum(sub * sub, seg, num_segments=B) / counts
    std = jnp.sqrt(var + 1e-6)[seg]
    return weight * sub / std + bias


if __name__ == "__main__":
    hidden_dim = 32
    batch_num_nodes = jnp.array([5, 7, 4], dtype=jnp.int32)   # 3 graphs, 16 nodes
    N = int(batch_num_nodes.sum())

    key = jax.random.PRNGKey(0)
    k1, k2, k3, k4 = jax.random.split(key, 4)
    x = jax.random.normal(k1, (N, hidden_dim), dtype=jnp.float32)

    # Learnable parameters of GraphNorm (norm_type='gn'); perturbed from the
    # init values (ones/zeros/ones) so the test exercises the full math.
    weight = 1.0 + 0.05 * jax.random.normal(k2, (hidden_dim,), dtype=jnp.float32)
    bias = 0.05 * jax.random.normal(k3, (hidden_dim,), dtype=jnp.float32)
    mean_scale = 1.0 + 0.05 * jax.random.normal(k4, (hidden_dim,), dtype=jnp.float32)

    out = graph_norm_pallas(x, weight, bias, mean_scale, batch_num_nodes)
    out = jax.block_until_ready(out)

    ref = graph_norm_ref(x, weight, bias, mean_scale, batch_num_nodes)
    assert out.shape == (N, hidden_dim)
    max_err = float(jnp.max(jnp.abs(out - ref)))
    assert jnp.allclose(out, ref, atol=2e-5, rtol=2e-5), (
        f"mismatch vs reference (max abs err {max_err})")

    print("KERNEL_OK")
</pallas_src>

<mosaic_0001>
module attributes {stable_mosaic.version = 11 : i64} {
  func.func @_graphnorm_stats_kernel(%arg0: i32, %arg1: memref<16x128xf32, #tpu.memory_space<vmem>>, %arg2: memref<1x128xf32, #tpu.memory_space<vmem>>, %arg3: memref<1x128xf32, #tpu.memory_space<vmem>>, %arg4: memref<1x128xf32, #tpu.memory_space<vmem>>, %arg5: memref<8x1xi32, #tpu.memory_space<vmem>>, %arg6: memref<8x1xi32, #tpu.memory_space<vmem>>, %arg7: memref<8x128xf32, #tpu.memory_space<vmem>>, %arg8: memref<8x128xf32, #tpu.memory_space<vmem>>, %arg9: memref<8x128xf32, #tpu.memory_space<vmem>>, %arg10: memref<8x128xf32, #tpu.memory_space<vmem>>) attributes {dimension_semantics = [#tpu.dimension_semantics<arbitrary>], iteration_bounds = array<i64: 1>, scalar_prefetch = 0 : i64, scratch_operands = 2 : i64, tpu.core_type = #tpu.core_type<tc>, window_params = [{transform_indices = @transform_0, window_bounds = array<i64: 16, 128>}, {pipeline_mode = #tpu.pipeline_mode<synchronous>, transform_indices = @transform_1, window_bounds = array<i64: 1, 128>}, {pipeline_mode = #tpu.pipeline_mode<synchronous>, transform_indices = @transform_2, window_bounds = array<i64: 1, 128>}, {pipeline_mode = #tpu.pipeline_mode<synchronous>, transform_indices = @transform_3, window_bounds = array<i64: 1, 128>}, {pipeline_mode = #tpu.pipeline_mode<synchronous>, transform_indices = @transform_4, window_bounds = array<i64: 8, 1>}, {pipeline_mode = #tpu.pipeline_mode<synchronous>, transform_indices = @transform_5, window_bounds = array<i64: 8, 1>}, {pipeline_mode = #tpu.pipeline_mode<synchronous>, transform_indices = @transform_6, window_bounds = array<i64: 8, 128>}, {pipeline_mode = #tpu.pipeline_mode<synchronous>, transform_indices = @transform_7, window_bounds = array<i64: 8, 128>}]} {
    %c0_i32 = arith.constant 0 : i32
    %0 = arith.cmpi eq, %arg0, %c0_i32 : i32
    %1 = arith.extui %0 : i1 to i32
    %c0_i32_0 = arith.constant 0 : i32
    %2 = arith.cmpi ne, %1, %c0_i32_0 : i32
    scf.if %2 {
      %cst_17 = arith.constant 0.000000e+00 : f32
      %30 = vector.broadcast %cst_17 : f32 to vector<8x128xf32>
      %c0_18 = arith.constant 0 : index
      %c0_19 = arith.constant 0 : index
      %31 = vector.load %arg9[%c0_18, %c0_19] : memref<8x128xf32, #tpu.memory_space<vmem>>, vector<8x128xf32>
      tpu.vector_store %arg9[%c0_18, %c0_19], %30 {strides = array<i32>} : memref<8x128xf32, #tpu.memory_space<vmem>>, vector<8x128xf32>,
      %cst_20 = arith.constant 0.000000e+00 : f32
      %32 = vector.broadcast %cst_20 : f32 to vector<8x128xf32>
      %c0_21 = arith.constant 0 : index
      %c0_22 = arith.constant 0 : index
      %33 = vector.load %arg10[%c0_21, %c0_22] : memref<8x128xf32, #tpu.memory_space<vmem>>, vector<8x128xf32>
      tpu.vector_store %arg10[%c0_21, %c0_22], %32 {strides = array<i32>} : memref<8x128xf32, #tpu.memory_space<vmem>>, vector<8x128xf32>,
    } else {
    }
    %c16_i32 = arith.constant 16 : i32
    %3 = arith.muli %arg0, %c16_i32 : i32
    %4 = tpu.iota {dimensions = array<i32: 1>} : vector<8x16xi32>
    %5 = vector.broadcast %3 : i32 to vector<8x16xi32>
    %6 = arith.addi %5, %4 : vector<8x16xi32>
    %c0 = arith.constant 0 : index
    %c0_1 = arith.constant 0 : index
    %7 = vector.load %arg5[%c0, %c0_1] : memref<8x1xi32, #tpu.memory_space<vmem>>, vector<8x1xi32>
    %c0_2 = arith.constant 0 : index
    %c0_3 = arith.constant 0 : index
    %8 = vector.load %arg6[%c0_2, %c0_3] : memref<8x1xi32, #tpu.memory_space<vmem>>, vector<8x1xi32>
    %9 = vector.broadcast %7 : vector<8x1xi32> to vector<8x16xi32>
    %10 = arith.cmpi sge, %6, %9 : vector<8x16xi32>
    %11 = arith.addi %7, %8 : vector<8x1xi32>
    %12 = vector.broadcast %11 : vector<8x1xi32> to vector<8x16xi32>
    %13 = arith.cmpi slt, %6, %12 : vector<8x16xi32>
    %14 = arith.andi %10, %13 : vector<8x16xi1>
    %15 = arith.extui %14 : vector<8x16xi1> to vector<8x16xi32>
    %16 = arith.sitofp %15 : vector<8x16xi32> to vector<8x16xf32>
    %c0_4 = arith.constant 0 : index
    %c0_5 = arith.constant 0 : index
    %17 = vector.load %arg1[%c0_4, %c0_5] : memref<16x128xf32, #tpu.memory_space<vmem>>, vector<16x128xf32>
    %c0_6 = arith.constant 0 : index
    %c0_7 = arith.constant 0 : index
    %18 = vector.load %arg9[%c0_6, %c0_7] : memref<8x128xf32, #tpu.memory_space<vmem>>, vector<8x128xf32>
    %cst = arith.constant dense<0.000000e+00> : vector<8x128xf32>
    %19 = tpu.matmul %16, %17, %cst {dimension_numbers = #tpu.dot_dimension_numbers<[1], [0], [0], [1], [0, 0, 1, 1], [], []>, precision = #tpu.contract_precision<fp32>} : vector<8x16xf32>, vector<16x128xf32>, vector<8x128xf32> -> vector<8x128xf32>
    %20 = arith.addf %18, %19 : vector<8x128xf32>
    %c0_8 = arith.constant 0 : index
    %c0_9 = arith.constant 0 : index
    %21 = vector.load %arg9[%c0_8, %c0_9] : memref<8x128xf32, #tpu.memory_space<vmem>>, vector<8x128xf32>
    tpu.vector_store %arg9[%c0_8, %c0_9], %20 {strides = array<i32>} : memref<8x128xf32, #tpu.memory_space<vmem>>, vector<8x128xf32>,
    %c0_10 = arith.constant 0 : index
    %c0_11 = arith.constant 0 : index
    %22 = vector.load %arg10[%c0_10, %c0_11] : memref<8x128xf32, #tpu.memory_space<vmem>>, vector<8x128xf32>
    %23 = arith.mulf %17, %17 : vector<16x128xf32>
    %cst_12 = arith.constant dense<0.000000e+00> : vector<8x128xf32>
    %24 = tpu.matmul %16, %23, %cst_12 {dimension_numbers = #tpu.dot_dimension_numbers<[1], [0], [0], [1], [0, 0, 1, 1], [], []>, precision = #tpu.contract_precision<fp32>} : vector<8x16xf32>, vector<16x128xf32>, vector<8x128xf32> -> vector<8x128xf32>
    %25 = arith.addf %22, %24 : vector<8x128xf32>
    %c0_13 = arith.constant 0 : index
    %c0_14 = arith.constant 0 : index
    %26 = vector.load %arg10[%c0_13, %c0_14] : memref<8x128xf32, #tpu.memory_space<vmem>>, vector<8x128xf32>
    tpu.vector_store %arg10[%c0_13, %c0_14], %25 {strides = array<i32>} : memref<8x128xf32, #tpu.memory_space<vmem>>, vector<8x128xf32>,
    %c0_i32_15 = arith.constant 0 : i32
    %27 = arith.cmpi eq, %arg0, %c0_i32_15 : i32
    %28 = arith.extui %27 : i1 to i32
    %c0_i32_16 = arith.constant 0 : i32
    %29 = arith.cmpi ne, %28, %c0_i32_16 : i32
    scf.if %29 {
      %c0_17 = arith.constant 0 : index
      %c0_18 = arith.constant 0 : index
      %30 = vector.load %arg6[%c0_17, %c0_18] : memref<8x1xi32, #tpu.memory_space<vmem>>, vector<8x1xi32>
      %c1_i32 = arith.constant 1 : i32
      %31 = vector.broadcast %c1_i32 : i32 to vector<8x1xi32>
      %32 = arith.maxsi %30, %31 : vector<8x1xi32>
      %33 = arith.sitofp %32 : vector<8x1xi32> to vector<8x1xf32>
      %cst_19 = arith.constant 1.000000e+00 : f32
      %34 = vector.broadcast %cst_19 : f32 to vector<8x1xf32>
      %35 = arith.divf %34, %33 : vector<8x1xf32>
      %c0_20 = arith.constant 0 : index
      %c0_21 = arith.constant 0 : index
      %36 = vector.load %arg9[%c0_20, %c0_21] : memref<8x128xf32, #tpu.memory_space<vmem>>, vector<8x128xf32>
      %37 = vector.broadcast %35 : vector<8x1xf32> to vector<8x128xf32>
      %38 = arith.mulf %36, %37 : vector<8x128xf32>
      %c0_22 = arith.constant 0 : index
      %c0_23 = arith.constant 0 : index
      %39 = vector.load %arg10[%c0_22, %c0_23] : memref<8x128xf32, #tpu.memory_space<vmem>>, vector<8x128xf32>
      %40 = vector.broadcast %35 : vector<8x1xf32> to vector<8x128xf32>
      %41 = arith.mulf %39, %40 : vector<8x128xf32>
      %c0_24 = arith.constant 0 : index
      %c0_25 = arith.constant 0 : index
      %42 = vector.load %arg4[%c0_24, %c0_25] : memref<1x128xf32, #tpu.memory_space<vmem>>, vector<1x128xf32>
      %43 = arith.mulf %38, %38 : vector<8x128xf32>
      %cst_26 = arith.constant 2.000000e+00 : f32
      %44 = vector.broadcast %cst_26 : f32 to vector<1x128xf32>
      %45 = arith.mulf %44, %42 : vector<1x128xf32>
      %46 = arith.mulf %42, %42 : vector<1x128xf32>
      %47 = arith.subf %45, %46 : vector<1x128xf32>
      %48 = vector.broadcast %47 : vector<1x128xf32> to vector<8x128xf32>
      %49 = arith.mulf %43, %48 : vector<8x128xf32>
      %50 = arith.subf %41, %49 : vector<8x128xf32>
      %cst_27 = arith.constant 0.000000e+00 : f32
      %51 = vector.broadcast %cst_27 : f32 to vector<8x128xf32>
      %52 = arith.maximumf %50, %51 : vector<8x128xf32>
      %c0_28 = arith.constant 0 : index
      %c0_29 = arith.constant 0 : index
      %53 = vector.load %arg2[%c0_28, %c0_29] : memref<1x128xf32, #tpu.memory_space<vmem>>, vector<1x128xf32>
      %cst_30 = arith.constant 9.99999997E-7 : f32
      %54 = vector.broadcast %cst_30 : f32 to vector<8x128xf32>
      %55 = arith.addf %52, %54 : vector<8x128xf32>
      %56 = math.rsqrt %55 : vector<8x128xf32>
      %57 = vector.broadcast %53 : vector<1x128xf32> to vector<8x128xf32>
      %58 = arith.mulf %57, %56 : vector<8x128xf32>
      %c0_31 = arith.constant 0 : index
      %c0_32 = arith.constant 0 : index
      %59 = vector.load %arg7[%c0_31, %c0_32] : memref<8x128xf32, #tpu.memory_space<vmem>>, vector<8x128xf32>
      tpu.vector_store %arg7[%c0_31, %c0_32], %58 {strides = array<i32>} : memref<8x128xf32, #tpu.memory_space<vmem>>, vector<8x128xf32>,
      %c0_33 = arith.constant 0 : index
      %c0_34 = arith.constant 0 : index
      %60 = vector.load %arg3[%c0_33, %c0_34] : memref<1x128xf32, #tpu.memory_space<vmem>>, vector<1x128xf32>
      %61 = vector.broadcast %42 : vector<1x128xf32> to vector<8x128xf32>
      %62 = arith.mulf %38, %61 : vector<8x128xf32>
      %63 = arith.mulf %62, %58 : vector<8x128xf32>
      %64 = vector.broadcast %60 : vector<1x128xf32> to vector<8x128xf32>
      %65 = arith.subf %64, %63 : vector<8x128xf32>
      %c0_35 = arith.constant 0 : index
      %c0_36 = arith.constant 0 : index
      %66 = vector.load %arg8[%c0_35, %c0_36] : memref<8x128xf32, #tpu.memory_space<vmem>>, vector<8x128xf32>
      tpu.vector_store %arg8[%c0_35, %c0_36], %65 {strides = array<i32>} : memref<8x128xf32, #tpu.memory_space<vmem>>, vector<8x128xf32>,
    } else {
    }
    return
  }
  func.func @transform_0(%arg0: i32) -> (i32, i32) {
    %c0_i32 = arith.constant 0 : i32
    %c0_i32_0 = arith.constant 0 : i32
    return %arg0, %c0_i32 : i32, i32
  }
  func.func @transform_1(%arg0: i32) -> (i32, i32) {
    %c0_i32 = arith.constant 0 : i32
    %c0_i32_0 = arith.constant 0 : i32
    %c0_i32_1 = arith.constant 0 : i32
    return %c0_i32, %c0_i32_0 : i32, i32
  }
  func.func @transform_2(%arg0: i32) -> (i32, i32) {
    %c0_i32 = arith.constant 0 : i32
    %c0_i32_0 = arith.constant 0 : i32
    %c0_i32_1 = arith.constant 0 : i32
    return %c0_i32, %c0_i32_0 : i32, i32
  }
  func.func @transform_3(%arg0: i32) -> (i32, i32) {
    %c0_i32 = arith.constant 0 : i32
    %c0_i32_0 = arith.constant 0 : i32
    %c0_i32_1 = arith.constant 0 : i32
    return %c0_i32, %c0_i32_0 : i32, i32
  }
  func.func @transform_4(%arg0: i32) -> (i32, i32) {
    %c0_i32 = arith.constant 0 : i32
    %c0_i32_0 = arith.constant 0 : i32
    %c0_i32_1 = arith.constant 0 : i32
    return %c0_i32, %c0_i32_0 : i32, i32
  }
  func.func @transform_5(%arg0: i32) -> (i32, i32) {
    %c0_i32 = arith.constant 0 : i32
    %c0_i32_0 = arith.constant 0 : i32
    %c0_i32_1 = arith.constant 0 : i32
    return %c0_i32, %c0_i32_0 : i32, i32
  }
  func.func @transform_6(%arg0: i32) -> (i32, i32) {
    %c0_i32 = arith.constant 0 : i32
    %c0_i32_0 = arith.constant 0 : i32
    %c0_i32_1 = arith.constant 0 : i32
    return %c0_i32, %c0_i32_0 : i32, i32
  }
  func.func @transform_7(%arg0: i32) -> (i32, i32) {
    %c0_i32 = arith.constant 0 : i32
    %c0_i32_0 = arith.constant 0 : i32
    %c0_i32_1 = arith.constant 0 : i32
    return %c0_i32, %c0_i32_0 : i32, i32
  }
}

</mosaic_0001>

<bundles_post_ra>
// kernel: tpu_custom_call.1
= control target key start
LH: loop header
LB: loop body
LE: loop exit
PB: predicated region body
PF: predicated region fallthrough
CT: control target
= control target key end

     0   :  { %13 = vsyncpa [#allocation5], 0  ;;  %s682_s0 = inlined_call_operand.vmem [shape: f32[16,128], index: 0, kind: input, shape index: {}]   ;;  %s683_s1 = inlined_call_operand.vmem [shape: f32[1,128], index: 1, kind: input, shape index: {}]   ;;  %s684_s2 = inlined_call_operand.hbm [shape: f32[1,128], index: 2, kind: input, shape index: {}]   ;;  %s685_s3 = inlined_call_operand.vmem [shape: f32[1,128], index: 3, kind: input, shape index: {}]   ;;  %s686_s4 = inlined_call_operand.vmem [shape: s32[8,1], index: 4, kind: input, shape index: {}]   ;;  %s687_s5 = inlined_call_operand.vmem [shape: s32[8,1], index: 5, kind: input, shape index: {}]   ;;  %s688_s6 = inlined_call_operand.hbm [shape: f32[8,128], index: 6, kind: output, shape index: {0}]   ;;  %s689_s7 = inlined_call_operand.hbm [shape: f32[8,128], index: 7, kind: output, shape index: {1}]  }
   0x1   :  { %14 = vsyncpa [#allocation6], 0 }
   0x2   :  { %15 = vsyncpa [#allocation9], 0  ;;  %s25_s26 = sshll.u32 %s684_s2, 4  ;;  %s600_s27 = smov [#allocation4]   ;;  %s26_s26 = int_to_ptr.hbm [resolvable:$true] %s25_s26 }
   0x3   :  { %s27_s28 = sshll.u32 %s600_s27, 4  ;;  %s28_s28 = int_to_ptr.vmem [resolvable:$true] %s27_s28 }
   0x4   :  { %30 = dma.hbm_to_vmem [thread:$0]  %s26_s26, 16, %s28_s28, [#allocation5]  }
   0x5   :  { %594 = dma.done.wait [#allocation5], 16  }
   0x6   :  { %595 = vsyncadd [#allocation5], 4294967280  ;;  %v601_v0 = vmov 0   ;;  %v52_v1 = vld [vmem:[%s686_s4] sm:$0xff]  ;;  %v67_v4 = vld [vmem:[%s682_s0 + $0x8] sm:$0xff]  ;;  %v48_v30 = vlaneseq  ;;  %vm69_vm7 = vcmask 130048  }
   0x7   :  { %513 = vset.pattern.permute.xlu0 %v601_v0  ;;  %514 = vset.pattern.permute.xlu1 %v601_v0  ;;  %v53_v2 = vld [vmem:[%s687_s5] sm:$0xff]  ;;  %v87_v5 = vand.u32 4294901760, %v67_v4  ;;  %v236_v16 = vmul.f32 %v67_v4, %v67_v4  ;;  %v602_v43 = vmov 0.0   ;;  %s603_s16 = smov [#allocation7]   ;;  %s475_s20 = sshll.u32 %s688_s6, 4  ;;  %s476_s20 = int_to_ptr.hbm [resolvable:$true] %s475_s20 }
   0x8   :  { %55 = vperm.xlu0 %513, %v52_v1   ;;  %v58_v3 = vadd.s32 %v53_v2, %v52_v1  ;;  %v66_v6 = vld [vmem:[%s682_s0] sm:$0xff]  ;;  %vm402_vm0 = vcmp.gt.s32.totalorder %v53_v2, 1  ;;  %v49_v34 = vand.u32 127, %v48_v30  ;;  %s473_s17 = sshll.u32 %s603_s16, 4  ;;  %s474_s17 = int_to_ptr.vmem [resolvable:$true] %s473_s17 }
   0x9   :  { %v115_v7 = vsub.f32 %v67_v4, %v87_v5  ;;  %v89_v8 = vand.u32 4294901760, %v66_v6  ;;  %172 = vmatpush.msra.mxu3 %v87_v5  ;;  %88 = vmatpush.msra.mxu0 %v87_v5  ;;  %v251_v17 = vand.u32 4294901760, %v236_v16  ;;  %v235_v18 = vmul.f32 %v66_v6, %v66_v6  ;;  %v429_v62 = vld [vmem:[%s685_s3] sm:$0x1] }
   0xa   :  { %v403_v28 = vsel %vm402_vm0, %v53_v2, 1  ;;  %v431_v0 = vmul.f32 2.0, %v429_v62  ;;  %v432_v1 = vmul.f32 %v429_v62, %v429_v62 }
   0xb   :  { %v116_v9 = vand.u32 4294901760, %v115_v7  ;;  %v121_v10 = vsub.f32 %v66_v6, %v89_v8  ;;  %147 = vmatpush.msra.mxu2 %v115_v7  ;;  %174 = vmatpush.msra.mxu3 %v89_v8  ;;  %v279_v19 = vsub.f32 %v236_v16, %v251_v17  ;;  %v253_v20 = vand.u32 4294901760, %v235_v18 }
   0xc   :  { %90 = vmatpush.msra.mxu0 %v89_v8  ;;  %v404_v29 = vcvt.s32.f32 %v403_v28  ;;  %v433_v6 = vsub.f32 %v431_v0, %v432_v1  ;;  %v516_v28 = vld [vmem:[%s683_s1] ss:$0 sm:$0xff]  ;;  %s486_s1 = sshll.u32 %s689_s7, 4  ;;  %s487_s1 = int_to_ptr.hbm [resolvable:$true] %s486_s1 }
   0xd   :  { %v117_v11 = vsub.f32 %v115_v7, %v116_v9  ;;  %v122_v12 = vand.u32 4294901760, %v121_v10  ;;  %150 = vmatpush.msra.mxu2 %v121_v10  ;;  %v280_v21 = vand.u32 4294901760, %v279_v19  ;;  %v285_v22 = vsub.f32 %v235_v18, %v253_v20 }
   0xe   :  { %199 = vmatpush.msrb.mxu0 %v116_v9  ;;  %518 = vrcp.f32 %v404_v29  ;;  %vm410_vm1 = vweird.f32 %v404_v29  ;;  %v414_v36 = vand.u32 2147483647, %v404_v29  ;;  %v416_v37 = vand.u32 2147483648, %v404_v29 }
   0xf   :  { %v118_v13 = vand.u32 4294901760, %v117_v11  ;;  %v123_v14 = vsub.f32 %v121_v10, %v122_v12  ;;  %252 = vmatpush.msrb.mxu2 %v251_v17  ;;  %v281_v23 = vsub.f32 %v279_v19, %v280_v21  ;;  %v286_v24 = vand.u32 4294901760, %v285_v22 }
  0x10   :  { %60 = vperm.xlu0 %513, %v58_v3   ;;  %203 = vmatpush.msrb.mxu0 %v122_v12  ;;  %v417_v39 = vor.u32 1.1754944e-38, %v416_v37  ;;  %vm415_vm4 = vcmp.eq.f32.partialorder %v414_v36, 8.507059e+37  ;;  %v435_v12 = vperm.slane %v433_v6, 0 }
  0x11   :  { %119 = vmatpush.msra.mxu1 %v118_v13  ;;  %v124_v15 = vand.u32 4294901760, %v123_v14  ;;  %254 = vmatpush.msrb.mxu2 %v253_v20  ;;  %v282_v25 = vand.u32 4294901760, %v281_v23  ;;  %v287_v26 = vsub.f32 %v285_v22, %v286_v24 }
  0x13   :  { %125 = vmatpush.msra.mxu1 %v124_v15  ;;  %283 = vmatpush.msrb.mxu3 %v282_v25  ;;  %v288_v27 = vand.u32 4294901760, %v287_v26 }
  0x14   :  { %v519_v32 = vpop.eup %518 }
  0x15   :  { %224 = vmatpush.msrb.mxu1 %v87_v5  ;;  %289 = vmatpush.msrb.mxu3 %v288_v27  ;;  %v406_v33 = vmul.f32 %v519_v32, %v404_v29  ;;  %vm411_vm2 = vweird.f32 %v519_v32  ;;  %v515_v27 = vld [vmem:[%s685_s3] ss:$0 sm:$0xff]  ;;  %s604_s3 = smov [#allocation8]  }
  0x16   :  { %vm412_vm3 = vmor %vm410_vm1, %vm411_vm2  ;;  %s484_s21 = sshll.u32 %s604_s3, 4  ;;  %s485_s21 = int_to_ptr.vmem [resolvable:$true] %s484_s21 }
  0x17   :  { %226 = vmatpush.msrb.mxu1 %v89_v8  ;;  %v407_v35 = vsub.f32 1.0, %v406_v33  ;;  %v517_v33 = vld [vmem:[#allocation4] ss:$0 sm:$0xff] }
  0x19   :  { %v408_v38 = vmul.f32 %v519_v32, %v407_v35 }
  0x1b   :  { %v409_v41 = vadd.f32 %v519_v32, %v408_v38 }
  0x1d   :  { %v413_v42 = vsel %vm412_vm3, %v519_v32, %v409_v41 }
  0x1e   :  { %v418_v45 = vsel %vm415_vm4, %v417_v39, %v413_v42 }
  0x1f   :  { %423 = vperm.xlu1 %514, %v418_v45  }
  0x7a   :  { %v56_v31 = vpop.permute.xlu0 %55 }
  0x7b   :  { %vm57_vm5 = vcmp.ge.s32.totalorder %v49_v34, %v56_v31 }
  0x82   :  { %v61_v40 = vpop.permute.xlu0 %60 }
  0x83   :  { %vm62_vm6 = vcmp.lt.s32.totalorder %v49_v34, %v61_v40 }
  0x84   :  { %vm63_vm8 = vmand %vm57_vm5, %vm62_vm6 }
  0x85   :  { %v501_v44 = vsel %vm63_vm8, 1.0, %v602_v43 }
  0x86   :  { %502 = vmatmul.msk.f32.vlgmr.msra.gmra.mxu1 %vm69_vm7, %v501_v44  ;;  %v71_v46 = vsel %vm69_vm7, %v501_v44, 0 }
  0x87   :  { %v92_v47 = vsub.f32 %v71_v46, %v71_v46  ;;  %336 = vmatpush.msra.mxu1 %v251_v17 }
  0x89   :  { %153 = vmatmul.f32.vlgmr.msra.gmra.mxu2 %v92_v47  ;;  %v93_v48 = vand.u32 4294901760, %v92_v47  ;;  %338 = vmatpush.msra.mxu1 %v253_v20 }
  0x8a   :  { %363 = vmatpush.msra.mxu2 %v280_v21 }
  0x8b   :  { %178 = vmatmul.f32.vlgmr.msra.gmra.mxu3 %v93_v48  ;;  %v94_v49 = vsub.f32 %v92_v47, %v93_v48 }
  0x8c   :  { %388 = vmatpush.msra.mxu3 %v251_v17  ;;  %367 = vmatpush.msra.mxu2 %v286_v24 }
  0x8d   :  { %v95_v50 = vand.u32 4294901760, %v94_v49 }
  0x8e   :  { %504 = vmatmul.msk.f32.vlgmr.msrb.gmra.mxu1 %vm69_vm7, %v501_v44  ;;  %390 = vmatpush.msra.mxu3 %v253_v20 }
  0x8f   :  { %96 = vmatmul.f32.vlgmr.msra.gmra.mxu0 %v95_v50 }
  0x90   :  { %311 = vmatpush.msra.mxu0 %v279_v19 }
  0x91   :  { %260 = vmatmul.f32.vlgmr.msrb.gmra.mxu2 %v95_v50  ;;  %v424_v3 = vpop.permute.xlu1 %423 }
  0x92   :  { %314 = vmatpush.msra.mxu0 %v285_v22 }
  0x93   :  { %505 = vmatmul.msk.f32.vlgmr.msrb.gmra.mxu3 %vm69_vm7, %v501_v44 }
  0x96   :  { %342 = vmatmul.f32.vlgmr.msra.gmra.mxu1 %v93_v48 }
  0x97   :  { %503 = vmatmul.msk.f32.vlgmr.msrb.gmra.mxu0 %vm69_vm7, %v501_v44 }
  0x99   :  { %506 = vmatmul.msk.f32.vlgmr.msra.gmra.mxu2 %vm69_vm7, %v501_v44 }
  0x9b   :  { %507 = vmatmul.msk.f32.vlgmr.msra.gmra.mxu3 %vm69_vm7, %v501_v44 }
  0x9f   :  { %317 = vmatmul.f32.vlgmr.msra.gmra.mxu0 %v92_v47 }
 0x103   :  { %v128_v51 = vpop.f32.mrf.mxu1 }
 0x10b   :  { %v229_v58 = vpop.f32.mrf.mxu1 }
 0x10c   :  { %v97_v52 = vpop.f32.mrf.mxu0  ;;  %v154_v53 = vpop.f32.mrf.mxu2 }
 0x10d   :  { %v129_v54 = vadd.f32 %v128_v51, %v97_v52 }
 0x10e   :  { %v179_v55 = vpop.f32.mrf.mxu3 }
 0x10f   :  { %v155_v56 = vadd.f32 %v154_v53, %v129_v54 }
 0x111   :  { %v180_v57 = vadd.f32 %v179_v55, %v155_v56 }
 0x113   :  { %v343_v9 = vpop.f32.mrf.mxu1 }
 0x114   :  { %v206_v59 = vpop.f32.mrf.mxu0  ;;  %v261_v61 = vpop.f32.mrf.mxu2 }
 0x115   :  { %v207_v60 = vadd.f32 %v206_v59, %v180_v57 }
 0x116   :  { %v292_v63 = vpop.f32.mrf.mxu3 }
 0x117   :  { %v230_v2 = vadd.f32 %v229_v58, %v207_v60  ;;  %v293_v4 = vadd.f32 %v292_v63, %v261_v61 }
 0x119   :  { %v426_v7 = vmul.f32 %v424_v3, %v230_v2 }
 0x11b   :  { %v430_v13 = vmul.f32 %v426_v7, %v426_v7  ;;  %v461_v31 = vmul.f32 %v515_v27, %v426_v7 }
 0x11c   :  { %v318_v5 = vpop.f32.mrf.mxu0  ;;  %v370_v11 = vpop.f32.mrf.mxu2 }
 0x11d   :  { %v319_v8 = vadd.f32 %v318_v5, %v293_v4  ;;  %v437_v17 = vmul.f32 %v435_v12, %v430_v13 }
 0x11e   :  { %v393_v15 = vpop.f32.mrf.mxu3 }
 0x11f   :  { %v344_v10 = vadd.f32 %v343_v9, %v319_v8 }
 0x121   :  { %v371_v14 = vadd.f32 %v370_v11, %v344_v10 }
 0x123   :  { %v394_v16 = vadd.f32 %v393_v15, %v371_v14 }
 0x125   :  { %v428_v18 = vmul.f32 %v424_v3, %v394_v16 }
 0x127   :  { %v438_v19 = vsub.f32 %v428_v18, %v437_v17 }
 0x129   :  { %v439_v20 = vmax.f32 %v438_v19, 0.0 }
 0x12b   :  { %v441_v21 = vadd.f32 1e-06, %v439_v20 }
 0x12d   :  { %520 = vrsqrt.f32 %v441_v21  ;;  %vm448_vm10 = vweird.f32 %v441_v21 }
 0x133   :  { %v521_v22 = vpop.eup %520 }
 0x134   :  { %v443_v23 = vmul.f32 %v521_v22, %v441_v21  ;;  %vm449_vm9 = vweird.f32 %v521_v22 }
 0x135   :  { %vm450_vm11 = vmor %vm448_vm10, %vm449_vm9 }
 0x136   :  { %v444_v24 = vmul.f32 %v521_v22, %v443_v23 }
 0x138   :  { %v445_v25 = vmul.f32 0.5, %v444_v24 }
 0x13a   :  { %v446_v26 = vsub.f32 1.5, %v445_v25 }
 0x13c   :  { %v447_v29 = vmul.f32 %v521_v22, %v446_v26 }
 0x13e   :  { %v451_v30 = vsel %vm450_vm11, %v521_v22, %v447_v29 }
 0x13f   :  { %v455_v32 = vmul.f32 %v516_v28, %v451_v30 }
 0x141   :  { %456 = vst [vmem:[#allocation7] sm:$0xff] %v455_v32  ;;  %v462_v34 = vmul.f32 %v461_v31, %v455_v32 }
 0x142   :  { %478 = dma.vmem_to_hbm [thread:$0]  %s474_s17, 128, %s476_s20, [#allocation6]  }
 0x143   :  { %v466_v35 = vsub.f32 %v517_v33, %v462_v34 }
 0x145   :  { %467 = vst [vmem:[#allocation8] sm:$0xff] %v466_v35 }
 0x146   :  { %489 = dma.vmem_to_hbm [thread:$0]  %s485_s21, 128, %s487_s1, [#allocation9]  }
 0x147   :  { %596 = dma.done.wait [#allocation6], 128  }
 0x148   :  { %597 = vsyncadd [#allocation6], 4294967168 }
 0x149   :  { %598 = dma.done.wait [#allocation9], 128  }
 0x14a   :  { %599 = vsyncadd [#allocation9], 4294967168 }
 0x14b   :  { %498 = vsyncpa [#allocation5], 1 }
 0x14c   :  { %499 = vsyncpa [#allocation6], 1 }
 0x14d   :  { %500 = vsyncpa [#allocation9], 1 }

</bundles_post_ra>
